<compile_context>
chip_gen: v7x
topology: tpu7x:2x2x1
jax: 0.10.0
libtpu: 0.0.40
codegen_flags: <defaults>
</compile_context>

<pallas_src>
import functools

import jax
import jax.numpy as jnp
from jax.experimental import pallas as pl
from jax.experimental.pallas import tpu as pltpu


def _ru(x, m):
    return ((x + m - 1) // m) * m


def _divisors(n):
    ds = set()
    i = 1
    while i * i <= n:
        if n % i == 0:
            ds.add(i)
            ds.add(n // i)
        i += 1
    return sorted(ds)


def _vmem_capacity_bytes():
    try:
        return int(pltpu.get_tpu_info().vmem_capacity_bytes)
    except Exception:
        return 128 << 20          # v5e/v6e-class fallback


def _choose_tiling(rows, cols):
    """Pick (block_rows, col_block, vmem_limit_bytes) with NO padding of x.

    Every chosen block dim is either a multiple of (8, 128) or equal to the
    full array dim, so no padded copy of x is ever materialized.
    """
    itemsize = 4
    vmem_cap = _vmem_capacity_bytes()
    # Per-generation x-block byte target.
    if vmem_cap <= (64 << 20):        # v7x-class: 64 MiB VMEM/TC, ~3.2 TB/s HBM
        target = 8 << 20
    else:                             # v5e / v6e: 2 MiB is ~85% of roofline
        target = 2 << 20

    # ---- column blocking: only if one 8-row stripe of full cols is too big --
    col_block = cols
    if 8 * _ru(cols, 128) * itemsize > target:
        col_cands = [d for d in _divisors(cols) if d % 128 == 0]
        if col_cands:
            want = max(128, (target // (8 * itemsize)) // 128 * 128)
            fit = [d for d in col_cands if d <= want]
            col_block = max(fit) if fit else min(col_cands)
        # else: cols is huge and not a multiple of 128 -> keep the full-dim
        # block and rely on the raised vmem limit below (pathological case).
    c128 = _ru(col_block, 128)

    # ---- row blocking --------------------------------------------------------
    max_rows = max(8, (target // (c128 * itemsize)) // 8 * 8)
    row_cands = [d for d in _divisors(rows) if d % 8 == 0]
    if row_cands:
        fit = [d for d in row_cands if d <= max_rows]
        if not fit:
            block_rows = min(row_cands)
        elif cols // col_block == 1:
            # Guarantee >=2 grid steps when possible so v7x's 2nd TC is used.
            multi = [d for d in fit if rows // d >= 2]
            block_rows = max(multi) if multi else max(fit)
        else:
            block_rows = max(fit)
    else:
        # rows not a multiple of 8: the only pad-free block is the full dim.
        block_rows = rows

    # ---- VMEM limit: in + out x blocks, double-buffered, plus slack ---------
    block_vmem = _ru(block_rows, 8) * c128 * itemsize
    vmem_limit = 5 * block_vmem + (4 << 20)
    vmem_limit = max(vmem_limit, 16 << 20)
    vmem_limit = min(vmem_limit, int(vmem_cap * 0.75))
    return block_rows, col_block, int(vmem_limit)


def _watermark_kernel(mask_ref, t_ref, x_ref, o_ref):
    # mask_ref: VMEM (block_rows, 1) int32 -- 1 iff this row's sample is selected
    # t_ref   : VMEM (1, col_block) f32    -- watermark template chunk
    # x_ref   : VMEM (block_rows, col_block) f32
    x = x_ref[...]
    t = t_ref[...]                        # (1, C) broadcasts over rows
    blended = x - t * (x + 0.75)          # == (1 - t) * x + t * (-0.75)
    sel = mask_ref[...] != 0              # (R, 1) broadcasts over lanes
    o_ref[...] = jnp.where(sel, blended, x).astype(o_ref.dtype)


@functools.partial(jax.jit, donate_argnums=(0,))
def watermark_apply(x, y, template, label=0):
    """Pallas implementation of Watermark.forward: returns (x', y). x is donated."""
    B, C, H, W = x.shape
    rows, cols = B * C, H * W

    # Lane-dense slab: pure reshape of a contiguous array -> no data movement.
    x_flat = x.reshape(rows, cols)
    t = template.astype(jnp.float32).reshape(1, cols)

    sel = (y[:, 0] == label).astype(jnp.int32)          # (B,)
    mask = jnp.repeat(sel, C)[:, None]                  # (B*C, 1)

    block_rows, col_block, vmem_limit = _choose_tiling(rows, cols)
    # cols outermost / rows innermost so the template block stays resident
    # across the inner loop (its block index does not change -> no re-DMA).
    grid = (cols // col_block, rows // block_rows)

    out = pl.pallas_call(
        _watermark_kernel,
        out_shape=jax.ShapeDtypeStruct((rows, cols), x.dtype),
        grid=grid,
        in_specs=[
            pl.BlockSpec((block_rows, 1), lambda j, i: (i, 0)),          # mask
            pl.BlockSpec((1, col_block), lambda j, i: (0, j)),           # template
            pl.BlockSpec((block_rows, col_block), lambda j, i: (i, j)),  # x slab
        ],
        out_specs=pl.BlockSpec((block_rows, col_block), lambda j, i: (i, j)),
        input_output_aliases={2: 0},   # x slab (donated) is updated in place
        compiler_params=pltpu.CompilerParams(
            dimension_semantics=("parallel", "parallel"),
            vmem_limit_bytes=vmem_limit),
    )(mask, t, x_flat)

    # TODO(synk): for sparse selections, a PrefetchScalarGridSpec path that
    # iterates only over a compacted list of selected samples (data-dependent
    # index_map; unselected rows untouched via the alias) would cut HBM traffic
    # below the dense roofline.
    return out.reshape(B, C, H, W), y


def make_template(shape, wm_h, wm_w, key):
    """Deterministic synthetic watermark (stands in for imageio.imread(path))."""
    wm = jax.random.randint(key, (wm_h, wm_w), 0, 256).astype(jnp.float32)
    template = jnp.zeros((shape, shape), dtype=jnp.float32)
    # template[..., -2 - h:-2, -2 - w:-2] = 1 - wm / 255
    template = template.at[shape - 2 - wm_h:shape - 2,
                           shape - 2 - wm_w:shape - 2].set(1.0 - wm / 255.0)
    return template


if __name__ == "__main__":
    key = jax.random.PRNGKey(0)
    k_wm, k_x, k_y = jax.random.split(key, 3)

    B, C, S = 2, 4, 16          # small shapes; template side = S
    label = 0

    template = make_template(S, wm_h=8, wm_w=8, key=k_wm)
    x = jax.random.normal(k_x, (B, C, S, S), dtype=jnp.float32)
    y = jax.random.randint(k_y, (B, 2), 0, 2).astype(jnp.int32)

    # pure-JAX reference (computed BEFORE the kernel call: x is donated)
    sel_ref = (y[:, 0] == label)[:, None, None, None]
    blended_ref = (1.0 - template)[None, None] * x + template[None, None] * (-0.75)
    x_expect = jax.block_until_ready(jnp.where(sel_ref, blended_ref, x))

    x_out, y_out = watermark_apply(x, y, template, label)
    x_out = jax.block_until_ready(x_out)

    assert jnp.allclose(x_out, x_expect, atol=1e-5), "mismatch vs reference"
    assert jnp.array_equal(y_out, y)
    print("KERNEL_OK")
</pallas_src>

<mosaic_0001>
module attributes {stable_mosaic.version = 11 : i64} {
  func.func @_watermark_kernel(%arg0: i32, %arg1: i32, %arg2: memref<8x1xi32, #tpu.memory_space<vmem>>, %arg3: memref<1x256xf32, #tpu.memory_space<vmem>>, %arg4: memref<8x256xf32, #tpu.memory_space<vmem>>, %arg5: memref<8x256xf32, #tpu.memory_space<vmem>>) attributes {dimension_semantics = [#tpu.dimension_semantics<parallel>, #tpu.dimension_semantics<parallel>], iteration_bounds = array<i64: 1, 1>, scalar_prefetch = 0 : i64, scratch_operands = 0 : i64, tpu.core_type = #tpu.core_type<tc>, window_params = [{transform_indices = @transform_0, window_bounds = array<i64: 8, 1>}, {transform_indices = @transform_1, window_bounds = array<i64: 1, 256>}, {transform_indices = @transform_2, window_bounds = array<i64: 8, 256>}, {transform_indices = @transform_3, window_bounds = array<i64: 8, 256>}]} {
    %c0 = arith.constant 0 : index
    %c0_0 = arith.constant 0 : index
    %0 = vector.load %arg4[%c0, %c0_0] : memref<8x256xf32, #tpu.memory_space<vmem>>, vector<8x256xf32>
    %c0_1 = arith.constant 0 : index
    %c0_2 = arith.constant 0 : index
    %1 = vector.load %arg3[%c0_1, %c0_2] : memref<1x256xf32, #tpu.memory_space<vmem>>, vector<1x256xf32>
    %cst = arith.constant 7.500000e-01 : f32
    %2 = vector.broadcast %cst : f32 to vector<8x256xf32>
    %3 = arith.addf %0, %2 : vector<8x256xf32>
    %4 = vector.broadcast %1 : vector<1x256xf32> to vector<8x256xf32>
    %5 = arith.mulf %4, %3 : vector<8x256xf32>
    %6 = arith.subf %0, %5 : vector<8x256xf32>
    %c0_3 = arith.constant 0 : index
    %c0_4 = arith.constant 0 : index
    %7 = vector.load %arg2[%c0_3, %c0_4] : memref<8x1xi32, #tpu.memory_space<vmem>>, vector<8x1xi32>
    %c0_i32 = arith.constant 0 : i32
    %8 = vector.broadcast %c0_i32 : i32 to vector<8x1xi32>
    %9 = arith.cmpi ne, %7, %8 : vector<8x1xi32>
    %10 = vector.shape_cast %9 : vector<8x1xi1> to vector<8x1xi1>
    %11 = vector.broadcast %10 : vector<8x1xi1> to vector<8x256xi1>
    %12 = arith.select %11, %6, %0 : vector<8x256xi1>, vector<8x256xf32>
    %c0_5 = arith.constant 0 : index
    %c0_6 = arith.constant 0 : index
    %13 = vector.load %arg5[%c0_5, %c0_6] : memref<8x256xf32, #tpu.memory_space<vmem>>, vector<8x256xf32>
    tpu.vector_store %arg5[%c0_5, %c0_6], %12 {strides = array<i32>} : memref<8x256xf32, #tpu.memory_space<vmem>>, vector<8x256xf32>,
    return
  }
  func.func @transform_0(%arg0: i32, %arg1: i32) -> (i32, i32) {
    %c0_i32 = arith.constant 0 : i32
    %c0_i32_0 = arith.constant 0 : i32
    return %arg1, %c0_i32 : i32, i32
  }
  func.func @transform_1(%arg0: i32, %arg1: i32) -> (i32, i32) {
    %c0_i32 = arith.constant 0 : i32
    %c0_i32_0 = arith.constant 0 : i32
    return %c0_i32, %arg0 : i32, i32
  }
  func.func @transform_2(%arg0: i32, %arg1: i32) -> (i32, i32) {
    %c0_i32 = arith.constant 0 : i32
    return %arg1, %arg0 : i32, i32
  }
  func.func @transform_3(%arg0: i32, %arg1: i32) -> (i32, i32) {
    %c0_i32 = arith.constant 0 : i32
    return %arg1, %arg0 : i32, i32
  }
}

</mosaic_0001>

<bundles_post_ra>
// kernel: watermark_apply.1
= control target key start
LH: loop header
LB: loop body
LE: loop exit
PB: predicated region body
PF: predicated region fallthrough
CT: control target
= control target key end

     0   :  { %v51_v0 = vmov 0   ;;  %v20_v3 = vlaneseq  ;;  %s90_s0 = inlined_call_operand.vmem [shape: s32[8,1], index: 0, kind: input, shape index: {}]   ;;  %s91_s1 = inlined_call_operand.vmem [shape: f32[1,256], index: 1, kind: input, shape index: {}]   ;;  %s92_s2 = inlined_call_operand.vmem [shape: f32[8,256], index: 2, kind: input, shape index: {}, may-alias: {2,3}]   ;;  %s93_s3 = inlined_call_operand.vmem [shape: f32[8,256], index: 3, kind: output, shape index: {}, may-alias: {2,3}]  }
   0x1   :  { %50 = vset.pattern.permute.xlu0 %v51_v0  ;;  %v34_v1 = vld [vmem:[%s90_s0] sm:$0xff]  ;;  %v15_v8 = vld [vmem:[%s92_s2 + $0x8] sm:$0xff] }
   0x2   :  { %vm35_vm0 = vcmp.ne.s32.totalorder %v34_v1, 0  ;;  %v21_v4 = vshrl.u32 %v20_v3, 7  ;;  %v14_v7 = vld [vmem:[%s92_s2] sm:$0xff]  ;;  %v18_v11 = vadd.f32 0.75, %v15_v8 }
   0x3   :  { %v36_v2 = vsel %vm35_vm0, 1, %v51_v0  ;;  %v16_v9 = vld [vmem:[%s91_s1] sm:$0x3]  ;;  %v17_v10 = vadd.f32 0.75, %v14_v7 }
   0x4   :  { %38 = vperm.xlu0 %50, %v36_v2   ;;  %v22_v5 = vsub.s32 0, %v21_v4  ;;  %v26_v6 = vsub.s32 1, %v21_v4 }
   0x6   :  { %v23_v12 = vrot.slane %v16_v9, %v22_v5  ;;  %v27_v13 = vrot.slane %v16_v9, %v26_v6 }
   0x8   :  { %v30_v14 = vmul.f32 %v23_v12, %v17_v10  ;;  %v31_v15 = vmul.f32 %v27_v13, %v18_v11 }
   0xa   :  { %v32_v16 = vsub.f32 %v14_v7, %v30_v14  ;;  %v33_v17 = vsub.f32 %v15_v8, %v31_v15 }
  0x83   :  { %v39_v18 = vpop.permute.xlu0 %38 }
  0x84   :  { %vm40_vm1 = vcmp.eq.s32.totalorder %v39_v18, 1 }
  0x85   :  { %v41_v19 = vsel %vm40_vm1, %v32_v16, %v14_v7  ;;  %v42_v20 = vsel %vm40_vm1, %v33_v17, %v15_v8 }
  0x86   :  { %43 = vst [vmem:[%s93_s3] sm:$0xff] %v41_v19  ;;  %44 = vst [vmem:[%s93_s3 + $0x8] sm:$0xff] %v42_v20 }

</bundles_post_ra>
